<compile_context>
chip_gen: v5e
topology: v5e:2x2
jax: 0.10.0
libtpu: 0.0.40
codegen_flags: <defaults>
</compile_context>

<pallas_src>
import math
from functools import partial

import jax
import jax.numpy as jnp
from jax.experimental import pallas as pl
from jax.experimental.pallas import tpu as pltpu

MIB = 1024 * 1024


# ---------------------------------------------------------------------------
# helpers
# ---------------------------------------------------------------------------
def _round_up(x, m):
    return (x + m - 1) // m * m


def _vmem_capacity_bytes():
    try:
        return pltpu.get_tpu_info().vmem_capacity_bytes
    except Exception:
        return 64 * MIB  # conservative (v7x per-TC physical VMEM)


# ---------------------------------------------------------------------------
# Fused MLP kernel. One grid step = (batch element b, spatial tile n).
#   x_ref              : (1, TN, C_pad)       f32  coordinate features
#   refs[0], refs[1]   : (1, C_pad, F0)       f32  layer-0 weight (coord part,
#                        (in,out) layout) and (1, 1, F0) f32 bias (latent folded in)
#   refs[2l], refs[2l+1]: (1, Fin_l, Fout_l)  bf16 weight / (1, 1, Fout_l) f32 bias
#   refs[-1] (o_ref)   : (1, OUT_SUB, TN) bf16 (transposed) or (1, TN, F_out_pad) bf16
# ---------------------------------------------------------------------------
def _decoder_mlp_kernel(n_layers, apply_sigmoid, transpose_out, out_sub,
                        x_ref, *refs):
    o_ref = refs[-1]

    # Layer 0 in f32 (K is tiny); latent contribution already folded into bias.
    h = jnp.dot(x_ref[0], refs[0][0], preferred_element_type=jnp.float32)
    h = h + refs[1][0]

    # Remaining layers: bf16 resident activation, f32 MXU accumulation.
    for l in range(1, n_layers):
        h = jnp.maximum(h, 0.0).astype(jnp.bfloat16)
        h = jnp.dot(h, refs[2 * l][0], preferred_element_type=jnp.float32)
        h = h + refs[2 * l + 1][0]

    if apply_sigmoid:
        # exp + approximate reciprocal both go to the EUP slot.
        h = pl.reciprocal(1.0 + jnp.exp(-h), approx=True)

    if transpose_out:
        # Tiny out_dim: store (out_sub, TN) -> lane-dense, ~16x fewer bytes.
        o_ref[0] = jnp.transpose(h)[:out_sub, :].astype(o_ref.dtype)
    else:
        o_ref[0] = h.astype(o_ref.dtype)


# ---------------------------------------------------------------------------
# One-time parameter packing (static weights -> do this once, not per call).
#   params: list of (w, b) with w: (B, fout, fin), b: (B, fout)
#           (PyTorch BatchSeparatedLinear layout; layer-0 fin = latent+coord)
# ---------------------------------------------------------------------------
def pack_decoder_params(params, latent_dim):
    L = len(params)
    assert L >= 2, "expects at least one hidden layer"
    w0, b0 = params[0]
    B, h0, fin0 = w0.shape
    coord_dim = fin0 - latent_dim
    C_pad = _round_up(coord_dim, 8)
    F0 = _round_up(h0, 128)

    w0 = jnp.asarray(w0, jnp.float32)
    w0_lat = jnp.transpose(w0[:, :, :latent_dim], (0, 2, 1))   # latent comes FIRST
    w0_crd = jnp.transpose(w0[:, :, latent_dim:], (0, 2, 1))

    packed = {
        "w0c": jnp.pad(w0_crd, ((0, 0), (0, C_pad - coord_dim), (0, F0 - h0))),
        "w0l": jnp.pad(w0_lat, ((0, 0), (0, 0), (0, F0 - h0))),
        "b0": jnp.pad(jnp.asarray(b0, jnp.float32), ((0, 0), (0, F0 - h0)))[:, None, :],
        "ws": [],
        "bs": [],
    }
    for l in range(1, L):
        w, b = params[l]
        fout, fin = w.shape[1], w.shape[2]
        Fi, Fo = _round_up(fin, 128), _round_up(fout, 128)
        wt = jnp.transpose(jnp.asarray(w, jnp.float32), (0, 2, 1)).astype(jnp.bfloat16)
        packed["ws"].append(jnp.pad(wt, ((0, 0), (0, Fi - fin), (0, Fo - fout))))
        packed["bs"].append(
            jnp.pad(jnp.asarray(b, jnp.float32), ((0, 0), (0, Fo - fout)))[:, None, :])
    return packed


# ---------------------------------------------------------------------------
# Wrapper: ImplicitDecoder.forward (modulation=False path)
# ---------------------------------------------------------------------------
def implicit_decoder_forward(coords, latent, packed, *, out_dim,
                             apply_sigmoid=True, tn=None):
    B = coords.shape[0]
    spatial = coords.shape[1:-1]
    coord_dim = coords.shape[-1]

    w0c, w0l, b0 = packed["w0c"], packed["w0l"], packed["b0"]
    ws, bs = packed["ws"], packed["bs"]
    L = 1 + len(ws)
    C_pad, F0 = w0c.shape[1], w0c.shape[2]
    assert coord_dim <= C_pad
    F_out_pad = ws[-1].shape[-1]
    F_max = max([F0] + [w.shape[-1] for w in ws] + [w.shape[-2] for w in ws])
    out_sub = _round_up(out_dim, 8)
    transpose_out = out_sub <= 32   # tiny outputs -> transposed, sublane-thin store

    # ---- spatial flatten + footprint-based N tile ----------------------------
    N = math.prod(spatial) if spatial else 1
    out_pp = 2 * (out_sub * 2 if transpose_out else F_out_pad * 2)   # dbl-buffered out
    per_point = 2 * C_pad * 4 + out_pp + 8 * F_max                   # bytes per point
    if tn is None:
        tn_auto = max(512, min(8192, ((12 * MIB) // per_point) // 512 * 512))
    else:
        tn_auto = tn
    TN = min(int(tn_auto), _round_up(N, 128))
    TN = max(128, TN // 128 * 128)          # lane axis of transposed output
    N_pad = _round_up(N, TN)
    n_tiles = N_pad // TN

    x = coords.reshape(B, N, coord_dim).astype(jnp.float32)
    x_p = jnp.pad(x, ((0, 0), (0, N_pad - N), (0, C_pad - coord_dim)))

    # Fold the spatially-constant latent contribution into an effective layer-0
    # bias (exact: the block is linear). Cheap per-call einsum.
    b0_eff = b0 + jnp.einsum("bl,blf->bf",
                             latent.astype(jnp.float32), w0l)[:, None, :]

    # ---- grid / specs: weights resident across the inner N axis --------------
    if B > 1:
        grid = (B, n_tiles)
        xmap = lambda b, n: (b, n, 0)
        wmap = lambda b, n: (b, 0, 0)
        omap = (lambda b, n: (b, 0, n)) if transpose_out else (lambda b, n: (b, n, 0))
    else:
        grid = (n_tiles,)                   # dual-TC sharding splits along N
        xmap = lambda n: (0, n, 0)
        wmap = lambda n: (0, 0, 0)
        omap = (lambda n: (0, 0, n)) if transpose_out else (lambda n: (0, n, 0))

    in_specs = [pl.BlockSpec((1, TN, C_pad), xmap),
                pl.BlockSpec((1, C_pad, F0), wmap),
                pl.BlockSpec((1, 1, F0), wmap)]
    operands = [x_p, w0c, b0_eff]
    for w, b in zip(ws, bs):
        in_specs.append(pl.BlockSpec((1, w.shape[1], w.shape[2]), wmap))
        in_specs.append(pl.BlockSpec((1, 1, b.shape[2]), wmap))
        operands += [w, b]

    if transpose_out:
        out_shape = jax.ShapeDtypeStruct((B, out_sub, N_pad), jnp.bfloat16)
        out_spec = pl.BlockSpec((1, out_sub, TN), omap)
    else:
        out_shape = jax.ShapeDtypeStruct((B, N_pad, F_out_pad), jnp.bfloat16)
        out_spec = pl.BlockSpec((1, TN, F_out_pad), omap)

    # ---- explicit VMEM budget (v7x has 64 MiB physical per TC) ---------------
    w_res = 2 * (w0c.size * 4 + b0_eff.size * 4
                 + sum(w.size * 2 for w in ws)
                 + sum(b.size * 4 for b in bs)) // B
    act = 3 * TN * F_max * 4
    io = 2 * TN * C_pad * 4 + TN * out_pp
    vmem_limit = int(min(0.75 * _vmem_capacity_bytes(),
                         max(32 * MIB, w_res + act + io + 4 * MIB)))

    flops_pp = 2 * (C_pad * F0 + sum(w.shape[1] * w.shape[2] for w in ws))
    cost = pl.CostEstimate(
        flops=B * N_pad * flops_pp,
        transcendentals=(B * N_pad * F_out_pad) if apply_sigmoid else 0,
        bytes_accessed=int(x_p.size * 4 + w0c.size * 4 + b0_eff.size * 4
                           + sum(w.size * 2 for w in ws)
                           + sum(b.size * 4 for b in bs)
                           + math.prod(out_shape.shape) * 2),
    )

    out_p = pl.pallas_call(
        partial(_decoder_mlp_kernel, L, apply_sigmoid, transpose_out, out_sub),
        out_shape=out_shape,
        grid=grid,
        in_specs=in_specs,
        out_specs=out_spec,
        compiler_params=pltpu.CompilerParams(
            dimension_semantics=("parallel",) * len(grid),
            vmem_limit_bytes=vmem_limit,
        ),
        cost_estimate=cost,
    )(*operands)

    if transpose_out:
        out = jnp.transpose(out_p[:, :out_dim, :N], (0, 2, 1))
    else:
        out = out_p[:, :N, :out_dim]
    return out.astype(jnp.float32).reshape((B,) + spatial + (out_dim,))


# ---------------------------------------------------------------------------
# Parameter init (deterministic, mirrors BatchSeparatedLinear.init_weights):
#   weight ~ kaiming_uniform(a=sqrt(5)) => U(-1/sqrt(fan_in), 1/sqrt(fan_in))
#   bias   ~ U(-1/fan_in, 1/fan_in)
# ---------------------------------------------------------------------------
def init_params(key, batch_size, in_dim, out_dim, hidden_dims):
    in_dims = [in_dim] + list(hidden_dims)
    out_dims = list(hidden_dims) + [out_dim]
    params = []
    for fin, fout in zip(in_dims, out_dims):
        key, kw, kb = jax.random.split(key, 3)
        w = jax.random.uniform(kw, (batch_size, fout, fin), jnp.float32,
                               minval=-1.0 / math.sqrt(fin), maxval=1.0 / math.sqrt(fin))
        b = jax.random.uniform(kb, (batch_size, fout), jnp.float32,
                               minval=-1.0 / fin, maxval=1.0 / fin)
        params.append((w, b))
    return params


# pure-JAX f32 reference of the original ImplicitDecoder math (concat path)
def _ref_implicit_decoder(coords, latent, params, *, apply_sigmoid=True):
    B = coords.shape[0]
    spatial = coords.shape[1:-1]
    n = math.prod(spatial) if spatial else 1
    c = coords.shape[-1]
    lat = jnp.broadcast_to(latent[:, None, :], (B, n, latent.shape[-1]))
    h = jnp.concatenate([lat, coords.reshape(B, n, c)], axis=-1)
    for i, (w, b) in enumerate(params):
        h = jnp.einsum("bnf,bof->bno", h, w) + b[:, None, :]
        if i != len(params) - 1:
            h = jnp.maximum(h, 0.0)
    if apply_sigmoid:
        h = jax.nn.sigmoid(h)
    return h.reshape((B,) + spatial + (params[-1][0].shape[1],))


if __name__ == "__main__":
    B = 2
    coord_dim = 2
    latent_dim = 8
    out_dim = 3
    hidden_dims = [32, 32]
    H = W = 16  # spatial

    key = jax.random.PRNGKey(0)
    key, kc, kl = jax.random.split(key, 3)
    coords = jax.random.uniform(kc, (B, H, W, coord_dim), jnp.float32,
                                minval=-1.0, maxval=1.0)
    latent = jax.random.normal(kl, (B, latent_dim), jnp.float32)

    params = init_params(key, B, latent_dim + coord_dim, out_dim, hidden_dims)

    # One-time packing (static weights) -> hoisted out of the per-call path.
    packed = pack_decoder_params(params, latent_dim)

    fwd = jax.jit(partial(implicit_decoder_forward, out_dim=out_dim,
                          apply_sigmoid=True))
    out = jax.block_until_ready(fwd(coords, latent, packed))

    ref = _ref_implicit_decoder(coords, latent, params, apply_sigmoid=True)
    assert out.shape == (B, H, W, out_dim), out.shape
    max_err = float(jnp.max(jnp.abs(out - ref)))
    assert jnp.allclose(out, ref, atol=2e-2, rtol=2e-2), f"mismatch vs reference: {max_err}"

    print("KERNEL_OK")
</pallas_src>

<mosaic_0001>
module attributes {stable_mosaic.version = 11 : i64} {
  func.func @_decoder_mlp_kernel(%arg0: i32, %arg1: i32, %arg2: memref<1x256x8xf32, #tpu.memory_space<vmem>>, %arg3: memref<1x8x128xf32, #tpu.memory_space<vmem>>, %arg4: memref<1x1x128xf32, #tpu.memory_space<vmem>>, %arg5: memref<1x128x128xbf16, #tpu.memory_space<vmem>>, %arg6: memref<1x1x128xf32, #tpu.memory_space<vmem>>, %arg7: memref<1x128x128xbf16, #tpu.memory_space<vmem>>, %arg8: memref<1x1x128xf32, #tpu.memory_space<vmem>>, %arg9: memref<1x8x256xbf16, #tpu.memory_space<vmem>>) attributes {dimension_semantics = [#tpu.dimension_semantics<parallel>, #tpu.dimension_semantics<parallel>], iteration_bounds = array<i64: 2, 1>, scalar_prefetch = 0 : i64, scratch_operands = 0 : i64, tpu.core_type = #tpu.core_type<tc>, window_params = [{transform_indices = @transform_0, window_bounds = array<i64: 1, 256, 8>}, {transform_indices = @transform_1, window_bounds = array<i64: 1, 8, 128>}, {transform_indices = @transform_2, window_bounds = array<i64: 1, 1, 128>}, {transform_indices = @transform_3, window_bounds = array<i64: 1, 128, 128>}, {transform_indices = @transform_4, window_bounds = array<i64: 1, 1, 128>}, {transform_indices = @transform_5, window_bounds = array<i64: 1, 128, 128>}, {transform_indices = @transform_6, window_bounds = array<i64: 1, 1, 128>}, {transform_indices = @transform_7, window_bounds = array<i64: 1, 8, 256>}]} {
    %c0 = arith.constant 0 : index
    %c0_0 = arith.constant 0 : index
    %c0_1 = arith.constant 0 : index
    %0 = vector.load %arg2[%c0, %c0_0, %c0_1] : memref<1x256x8xf32, #tpu.memory_space<vmem>>, vector<1x256x8xf32>
    %1 = vector.shape_cast %0 : vector<1x256x8xf32> to vector<256x8xf32>
    %c0_2 = arith.constant 0 : index
    %c0_3 = arith.constant 0 : index
    %c0_4 = arith.constant 0 : index
    %2 = vector.load %arg3[%c0_2, %c0_3, %c0_4] : memref<1x8x128xf32, #tpu.memory_space<vmem>>, vector<1x8x128xf32>
    %3 = vector.shape_cast %2 : vector<1x8x128xf32> to vector<8x128xf32>
    %cst = arith.constant dense<0.000000e+00> : vector<256x128xf32>
    %4 = tpu.matmul %1, %3, %cst {dimension_numbers = #tpu.dot_dimension_numbers<[1], [0], [0], [1], [0, 0, 1, 1], [], []>} : vector<256x8xf32>, vector<8x128xf32>, vector<256x128xf32> -> vector<256x128xf32>
    %c0_5 = arith.constant 0 : index
    %c0_6 = arith.constant 0 : index
    %c0_7 = arith.constant 0 : index
    %5 = vector.load %arg4[%c0_5, %c0_6, %c0_7] : memref<1x1x128xf32, #tpu.memory_space<vmem>>, vector<1x1x128xf32>
    %6 = vector.shape_cast %5 : vector<1x1x128xf32> to vector<1x128xf32>
    %7 = vector.broadcast %6 : vector<1x128xf32> to vector<256x128xf32>
    %8 = arith.addf %4, %7 : vector<256x128xf32>
    %cst_8 = arith.constant 0.000000e+00 : f32
    %9 = vector.broadcast %cst_8 : f32 to vector<256x128xf32>
    %10 = arith.maximumf %8, %9 : vector<256x128xf32>
    %11 = arith.truncf %10 : vector<256x128xf32> to vector<256x128xbf16>
    %c0_9 = arith.constant 0 : index
    %c0_10 = arith.constant 0 : index
    %c0_11 = arith.constant 0 : index
    %12 = vector.load %arg5[%c0_9, %c0_10, %c0_11] : memref<1x128x128xbf16, #tpu.memory_space<vmem>>, vector<1x128x128xbf16>
    %13 = vector.shape_cast %12 : vector<1x128x128xbf16> to vector<128x128xbf16>
    %cst_12 = arith.constant dense<0.000000e+00> : vector<256x128xf32>
    %14 = tpu.matmul %11, %13, %cst_12 {dimension_numbers = #tpu.dot_dimension_numbers<[1], [0], [0], [1], [0, 0, 1, 1], [], []>} : vector<256x128xbf16>, vector<128x128xbf16>, vector<256x128xf32> -> vector<256x128xf32>
    %c0_13 = arith.constant 0 : index
    %c0_14 = arith.constant 0 : index
    %c0_15 = arith.constant 0 : index
    %15 = vector.load %arg6[%c0_13, %c0_14, %c0_15] : memref<1x1x128xf32, #tpu.memory_space<vmem>>, vector<1x1x128xf32>
    %16 = vector.shape_cast %15 : vector<1x1x128xf32> to vector<1x128xf32>
    %17 = vector.broadcast %16 : vector<1x128xf32> to vector<256x128xf32>
    %18 = arith.addf %14, %17 : vector<256x128xf32>
    %cst_16 = arith.constant 0.000000e+00 : f32
    %19 = vector.broadcast %cst_16 : f32 to vector<256x128xf32>
    %20 = arith.maximumf %18, %19 : vector<256x128xf32>
    %21 = arith.truncf %20 : vector<256x128xf32> to vector<256x128xbf16>
    %c0_17 = arith.constant 0 : index
    %c0_18 = arith.constant 0 : index
    %c0_19 = arith.constant 0 : index
    %22 = vector.load %arg7[%c0_17, %c0_18, %c0_19] : memref<1x128x128xbf16, #tpu.memory_space<vmem>>, vector<1x128x128xbf16>
    %23 = vector.shape_cast %22 : vector<1x128x128xbf16> to vector<128x128xbf16>
    %cst_20 = arith.constant dense<0.000000e+00> : vector<256x128xf32>
    %24 = tpu.matmul %21, %23, %cst_20 {dimension_numbers = #tpu.dot_dimension_numbers<[1], [0], [0], [1], [0, 0, 1, 1], [], []>} : vector<256x128xbf16>, vector<128x128xbf16>, vector<256x128xf32> -> vector<256x128xf32>
    %c0_21 = arith.constant 0 : index
    %c0_22 = arith.constant 0 : index
    %c0_23 = arith.constant 0 : index
    %25 = vector.load %arg8[%c0_21, %c0_22, %c0_23] : memref<1x1x128xf32, #tpu.memory_space<vmem>>, vector<1x1x128xf32>
    %26 = vector.shape_cast %25 : vector<1x1x128xf32> to vector<1x128xf32>
    %27 = vector.broadcast %26 : vector<1x128xf32> to vector<256x128xf32>
    %28 = arith.addf %24, %27 : vector<256x128xf32>
    %cst_24 = arith.constant 0.000000e+00 : f32
    %29 = vector.broadcast %cst_24 : f32 to vector<256x128xf32>
    %30 = arith.subf %29, %28 : vector<256x128xf32>
    %31 = math.exp %30 : vector<256x128xf32>
    %cst_25 = arith.constant 1.000000e+00 : f32
    %32 = vector.broadcast %cst_25 : f32 to vector<256x128xf32>
    %33 = arith.addf %32, %31 : vector<256x128xf32>
    %34 = tpu.reciprocal %33 {approx = true} : vector<256x128xf32> -> vector<256x128xf32>
    %35 = tpu.transpose %34, [1, 0] : vector<256x128xf32> -> vector<128x256xf32>
    %36 = vector.extract_strided_slice %35 {offsets = [0, 0], sizes = [8, 256], strides = [1, 1]} : vector<128x256xf32> to vector<8x256xf32>
    %37 = arith.truncf %36 : vector<8x256xf32> to vector<8x256xbf16>
    %c0_26 = arith.constant 0 : index
    %c0_27 = arith.constant 0 : index
    %c0_28 = arith.constant 0 : index
    %38 = vector.load %arg9[%c0_26, %c0_27, %c0_28] : memref<1x8x256xbf16, #tpu.memory_space<vmem>>, vector<1x8x256xbf16>
    %39 = vector.shape_cast %38 : vector<1x8x256xbf16> to vector<8x256xbf16>
    %40 = vector.shape_cast %37 : vector<8x256xbf16> to vector<1x8x256xbf16>
    tpu.vector_store %arg9[%c0_26, %c0_27, %c0_28], %40 {strides = array<i32>} : memref<1x8x256xbf16, #tpu.memory_space<vmem>>, vector<1x8x256xbf16>,
    return
  }
  func.func @transform_0(%arg0: i32, %arg1: i32) -> (i32, i32, i32) {
    %c0_i32 = arith.constant 0 : i32
    %c0_i32_0 = arith.constant 0 : i32
    return %arg0, %arg1, %c0_i32 : i32, i32, i32
  }
  func.func @transform_1(%arg0: i32, %arg1: i32) -> (i32, i32, i32) {
    %c0_i32 = arith.constant 0 : i32
    %c0_i32_0 = arith.constant 0 : i32
    %c0_i32_1 = arith.constant 0 : i32
    return %arg0, %c0_i32, %c0_i32_0 : i32, i32, i32
  }
  func.func @transform_2(%arg0: i32, %arg1: i32) -> (i32, i32, i32) {
    %c0_i32 = arith.constant 0 : i32
    %c0_i32_0 = arith.constant 0 : i32
    %c0_i32_1 = arith.constant 0 : i32
    return %arg0, %c0_i32, %c0_i32_0 : i32, i32, i32
  }
  func.func @transform_3(%arg0: i32, %arg1: i32) -> (i32, i32, i32) {
    %c0_i32 = arith.constant 0 : i32
    %c0_i32_0 = arith.constant 0 : i32
    %c0_i32_1 = arith.constant 0 : i32
    return %arg0, %c0_i32, %c0_i32_0 : i32, i32, i32
  }
  func.func @transform_4(%arg0: i32, %arg1: i32) -> (i32, i32, i32) {
    %c0_i32 = arith.constant 0 : i32
    %c0_i32_0 = arith.constant 0 : i32
    %c0_i32_1 = arith.constant 0 : i32
    return %arg0, %c0_i32, %c0_i32_0 : i32, i32, i32
  }
  func.func @transform_5(%arg0: i32, %arg1: i32) -> (i32, i32, i32) {
    %c0_i32 = arith.constant 0 : i32
    %c0_i32_0 = arith.constant 0 : i32
    %c0_i32_1 = arith.constant 0 : i32
    return %arg0, %c0_i32, %c0_i32_0 : i32, i32, i32
  }
  func.func @transform_6(%arg0: i32, %arg1: i32) -> (i32, i32, i32) {
    %c0_i32 = arith.constant 0 : i32
    %c0_i32_0 = arith.constant 0 : i32
    %c0_i32_1 = arith.constant 0 : i32
    return %arg0, %c0_i32, %c0_i32_0 : i32, i32, i32
  }
  func.func @transform_7(%arg0: i32, %arg1: i32) -> (i32, i32, i32) {
    %c0_i32 = arith.constant 0 : i32
    %c0_i32_0 = arith.constant 0 : i32
    return %arg0, %c0_i32, %arg1 : i32, i32, i32
  }
}

</mosaic_0001>

<bundles_post_ra>
// kernel: implicit_decoder_forward.1
= control target key start
LH: loop header
LB: loop body
LE: loop exit
PB: predicated region body
PF: predicated region fallthrough
CT: control target
= control target key end

     0   :  { %s1855_s24 = smov 0   ;;  %s1857_s25 = smov 0   ;;  %s2173_s0 = inlined_call_operand.vmem [shape: f32[2,256,8], index: 0, kind: input, shape index: {}]   ;;  %s2174_s1 = inlined_call_operand.vmem [shape: f32[2,8,128], index: 1, kind: input, shape index: {}]   ;;  %s2175_s2 = inlined_call_operand.vmem [shape: f32[2,1,128], index: 2, kind: input, shape index: {}]   ;;  %s2176_s3 = inlined_call_operand.vmem [shape: bf16[2,128,128], index: 3, kind: input, shape index: {}]   ;;  %s2177_s4 = inlined_call_operand.vmem [shape: f32[2,1,128], index: 4, kind: input, shape index: {}]   ;;  %s2178_s5 = inlined_call_operand.vmem [shape: bf16[2,128,128], index: 5, kind: input, shape index: {}]   ;;  %s2179_s6 = inlined_call_operand.vmem [shape: f32[2,1,128], index: 6, kind: input, shape index: {}]   ;;  %s2180_s7 = inlined_call_operand.vmem [shape: bf16[2,8,256], index: 7, kind: output, shape index: {}]  }
   0x1   :  { %s1859_s26 = smov 0  }
   0x2 LB: > { %s29_s27 = sadd.s32 1, %s1809_s25  ;;  %p1454_p0 = scmp.ge.s32.totalorder %s1813_s26, 1  ;;  %s1813_s26 = sphi %s1859_s26, %s17_s26   ;;  %s1809_s25 = sphi %s1857_s25, %s2182_s25   ;;  %s1805_s24 = sphi %s1855_s24, %s2181_s24  }
   0x3   : > { %p31_p1 = scmp.ge.s32.totalorder %s29_s27, 2  ;;  %p311_p2 = scmp.lt.s32.totalorder %s1813_s26, 3 }
   0x5   : > { %s2184_s27 = smov (%p31_p1, %s29_s27), 0  ;;  %p312_p3 = pnand %p1454_p0, %p311_p2 }
   0x6   : > { %p375_p4 = scmp.lt.s32.totalorder (!%p312_p3), %s1805_s24, 1 }
   0x7   : > { %315 = sbr.rel (%p312_p3) target bundleno = 757 (0x2f5), region = 48 }
   0xc   : > { %s2186_s24 = smov (!%p375_p4, %s1805_s24), 1  ;;  %vm454_vm0 = vcmask 64512  }
   0xd   : > { %s1562_s28 = sshll.u32 %s2186_s24, 8  ;;  %s1457_s29 = sshll.u32 %s2186_s24, 3 }
   0xe   : > { %s1880_s9 = scalar_lea.vmem %s2173_s0, %s1562_s28  ;;  %s387_s12 = scalar_lea.vmem %s2174_s1, %s1457_s29 }
   0xf   : > { %s390_s15 = scalar_lea.vmem %s2175_s2, %s2186_s24  ;;  %v449_v0 = vld [vmem:[%s387_s12] sm:$0xff]  ;;  %s398_s18 = scalar_lea.vmem %s2177_s4, %s2186_s24  ;;  %v418_v2 = vld [vmem:[%s1880_s9 + $0x8] sm:$0xff]  ;;  %v419_v3 = vld [vmem:[%s1880_s9 + $0x10] sm:$0xff] }
  0x10   : > { %v417_v1 = vld [vmem:[%s1880_s9] sm:$0xff]  ;;  %566 = vmatpush.msra.mxu0 %v449_v0  ;;  %1582 = vmatpush.msra.mxu3 %v449_v0  ;;  %s406_s21 = scalar_lea.vmem %s2179_s6, %s2186_s24  ;;  %v420_v4 = vld [vmem:[%s1880_s9 + $0x18] sm:$0xff]  ;;  %v422_v6 = vld [vmem:[%s1880_s9 + $0x28] sm:$0xff]  ;;  %s1563_s22 = sshll.u32 %s2186_s24, 6 }
  0x11   : > { %1464 = vmatmul.msk.f32.vlgmr.msra.gmra.mxu0 %vm454_vm0, %v417_v1  ;;  %v421_v5 = vld [vmem:[%s1880_s9 + $0x20] sm:$0xff]  ;;  %v423_v7 = vld [vmem:[%s1880_s9 + $0x30] sm:$0xff]  ;;  %v424_v8 = vld [vmem:[%s1880_s9 + $0x38] sm:$0xff]  ;;  %s1923_s30 = scalar_lea.vmem %s2176_s3, %s1563_s22  ;;  %s2001_s13 = scalar_lea.vmem %s2178_s5, %s1563_s22 }
  0x12   : > { %v425_v9 = vld [vmem:[%s1880_s9 + $0x40] sm:$0xff]  ;;  %v426_v10 = vld [vmem:[%s1880_s9 + $0x48] sm:$0xff]  ;;  %v1573_v11 = vld [vmem:[%s1923_s30 + $0x38] sm:$0xff]  ;;  %s415_s19 = scalar_lea.vmem %s2180_s7, %s1457_s29 }
  0x13   : > { %780 = vmatpush.bf16.msra.mxu1 %v1573_v11  ;;  %1583 = vmatpush.bf16.msrb.mxu3 %v1573_v11  ;;  %v427_v12 = vld [vmem:[%s1880_s9 + $0x50] sm:$0xff]  ;;  %v1571_v14 = vld [vmem:[%s1923_s30 + $0x28] sm:$0xff]  ;;  %v428_v15 = vld [vmem:[%s1880_s9 + $0x58] sm:$0xff] }
  0x14   : > { %v1572_v13 = vld [vmem:[%s1923_s30 + $0x30] sm:$0xff]  ;;  %v1570_v16 = vld [vmem:[%s1923_s30 + $0x20] sm:$0xff]  ;;  %v1569_v17 = vld [vmem:[%s1923_s30 + $0x18] sm:$0xff] }
  0x15   : > { %v429_v18 = vld [vmem:[%s1880_s9 + $0x60] sm:$0xff]  ;;  %v1568_v19 = vld [vmem:[%s1923_s30 + $0x10] sm:$0xff]  ;;  %v1567_v20 = vld [vmem:[%s1923_s30 + $0x8] sm:$0xff] }
  0x16   : > { %v430_v21 = vld [vmem:[%s1880_s9 + $0x68] sm:$0xff]  ;;  %v1566_v22 = vld [vmem:[%s1923_s30] sm:$0xff]  ;;  %v431_v23 = vld [vmem:[%s1880_s9 + $0x70] sm:$0xff] }
  0x17   : > { %781 = vmatpush.bf16.msra.mxu1 %v1572_v13  ;;  %1584 = vmatpush.bf16.msrb.mxu3 %v1572_v13  ;;  %v432_v24 = vld [vmem:[%s1880_s9 + $0x78] sm:$0xff]  ;;  %v433_v26 = vld [vmem:[%s1880_s9 + $0x80] sm:$0xff]  ;;  %v434_v30 = vld [vmem:[%s1880_s9 + $0x88] sm:$0xff] }
  0x18   : > { %v1953_v27 = vld [vmem:[%s390_s15] ss:$0 sm:$0xff]  ;;  %v435_v36 = vld [vmem:[%s1880_s9 + $0x90] sm:$0xff]  ;;  %v436_v39 = vld [vmem:[%s1880_s9 + $0x98] sm:$0xff] }
  0x19   : > { %1465 = vmatmul.msk.f32.gmra.mxu0 %vm454_vm0, %v418_v2  ;;  %v437_v45 = vld [vmem:[%s1880_s9 + $0xa0] sm:$0xff]  ;;  %v443_v46 = vld [vmem:[%s1880_s9 + $0xd0] sm:$0xff]  ;;  %v438_v49 = vld [vmem:[%s1880_s9 + $0xa8] sm:$0xff] }
  0x1a   : > { %1490 = vmatmul.msk.f32.vlgmr.msra.gmra.mxu3 %vm454_vm0, %v443_v46  ;;  %v444_v53 = vld [vmem:[%s1880_s9 + $0xd8] sm:$0xff]  ;;  %v439_v56 = vld [vmem:[%s1880_s9 + $0xb0] sm:$0xff]  ;;  %v445_v57 = vld [vmem:[%s1880_s9 + $0xe0] sm:$0xff] }
  0x1b   : > { %782 = vmatpush.bf16.msra.mxu1 %v1571_v14  ;;  %1585 = vmatpush.bf16.msrb.mxu3 %v1571_v14  ;;  %v440_v60 = vld [vmem:[%s1880_s9 + $0xb8] sm:$0xff]  ;;  %v446_v0 = vld [vmem:[%s1880_s9 + $0xe8] sm:$0xff] }
  0x1c   : > { %v448_v11 = vld [vmem:[%s1880_s9 + $0xf8] sm:$0xff] }
  0x1f   : > { %783 = vmatpush.bf16.msra.mxu1 %v1570_v16  ;;  %1586 = vmatpush.bf16.msrb.mxu3 %v1570_v16 }
  0x21   : > { %1466 = vmatmul.msk.f32.gmra.mxu0 %vm454_vm0, %v419_v3  ;;  %v441_v3 = vld [vmem:[%s1880_s9 + $0xc0] sm:$0xff] }
  0x22   : > { %1491 = vmatmul.msk.f32.gmra.mxu3 %vm454_vm0, %v444_v53 }
  0x23   : > { %784 = vmatpush.bf16.msra.mxu1 %v1569_v17  ;;  %1587 = vmatpush.bf16.msrb.mxu3 %v1569_v17  ;;  %v1581_v17 = vld [vmem:[%s2001_s13 + $0x38] sm:$0xff] }
  0x24   : > { %985 = vmatpush.bf16.msra.mxu2 %v1581_v17 }
  0x27   : > { %785 = vmatpush.bf16.msra.mxu1 %v1568_v19  ;;  %1588 = vmatpush.bf16.msrb.mxu3 %v1568_v19 }
  0x29   : > { %1467 = vmatmul.msk.f32.gmra.mxu0 %vm454_vm0, %v420_v4  ;;  %v447_v4 = vld [vmem:[%s1880_s9 + $0xf0] sm:$0xff] }
  0x2a   : > { %1492 = vmatmul.msk.f32.gmra.mxu3 %vm454_vm0, %v445_v57 }
  0x2b   : > { %786 = vmatpush.bf16.msra.mxu1 %v1567_v20  ;;  %1589 = vmatpush.bf16.msrb.mxu3 %v1567_v20 }
  0x2f   : > { %787 = vmatpush.bf16.msra.mxu1 %v1566_v22  ;;  %1590 = vmatpush.bf16.msrb.mxu3 %v1566_v22 }
  0x31   : > { %1468 = vmatmul.msk.f32.gmra.mxu0 %vm454_vm0, %v421_v5 }
  0x32   : > { %1493 = vmatmul.msk.f32.gmra.mxu3 %vm454_vm0, %v446_v0 }
  0x33   : > { %1591 = vmatpush.bf16.msra.mxu3 %v1581_v17 }
  0x39   : > { %1469 = vmatmul.msk.f32.gmra.mxu0 %vm454_vm0, %v422_v6 }
  0x3a   : > { %1494 = vmatmul.msk.f32.gmra.mxu3 %vm454_vm0, %v447_v4 }
  0x41   : > { %1470 = vmatmul.msk.f32.gmra.mxu0 %vm454_vm0, %v423_v7  ;;  %v442_v7 = vld [vmem:[%s1880_s9 + $0xc8] sm:$0xff] }
  0x42   : > { %1495 = vmatmul.msk.f32.gmra.mxu3 %vm454_vm0, %v448_v11 }
  0x49   : > { %1471 = vmatmul.msk.f32.gmra.mxu0 %vm454_vm0, %v424_v8 }
  0x51   : > { %1472 = vmatmul.msk.f32.gmra.mxu0 %vm454_vm0, %v425_v9 }
  0x59   : > { %1473 = vmatmul.msk.f32.gmra.mxu0 %vm454_vm0, %v426_v10 }
  0x61   : > { %1474 = vmatmul.msk.f32.gmra.mxu0 %vm454_vm0, %v427_v12 }
  0x69   : > { %1475 = vmatmul.msk.f32.gmra.mxu0 %vm454_vm0, %v428_v15 }
  0x71   : > { %1476 = vmatmul.msk.f32.gmra.mxu0 %vm454_vm0, %v429_v18 }
  0x79   : > { %1477 = vmatmul.msk.f32.gmra.mxu0 %vm454_vm0, %v430_v21  ;;  %v1580_v21 = vld [vmem:[%s2001_s13 + $0x30] sm:$0xff] }
  0x7a   : > { %986 = vmatpush.bf16.msra.mxu2 %v1580_v21  ;;  %1592 = vmatpush.bf16.msra.mxu3 %v1580_v21 }
  0x81   : > { %1478 = vmatmul.msk.f32.gmra.mxu0 %vm454_vm0, %v431_v23  ;;  %v1579_v23 = vld [vmem:[%s2001_s13 + $0x28] sm:$0xff] }
  0x82   : > { %987 = vmatpush.bf16.msra.mxu2 %v1579_v23  ;;  %1593 = vmatpush.bf16.msra.mxu3 %v1579_v23 }
  0x89   : > { %1479 = vmatmul.msk.f32.gmra.mxu0 %vm454_vm0, %v432_v24  ;;  %v1578_v24 = vld [vmem:[%s2001_s13 + $0x20] sm:$0xff] }
  0x8a   : > { %988 = vmatpush.bf16.msra.mxu2 %v1578_v24  ;;  %1594 = vmatpush.bf16.msra.mxu3 %v1578_v24 }
  0x8e   : > { %v568_v25 = vpop.f32.mrf.mxu0 }
  0x8f   : > { %v569_v28 = vadd.f32 %v1953_v27, %v568_v25 }
  0x91   : > { %1480 = vmatmul.msk.f32.gmra.mxu0 %vm454_vm0, %v433_v26  ;;  %v664_v32 = vmax.f32 %v569_v28, 0.0 }
  0x96   : > { %v571_v29 = vpop.f32.mrf.mxu0 }
  0x97   : > { %v572_v31 = vadd.f32 %v1953_v27, %v571_v29  ;;  %v1577_v29 = vld [vmem:[%s2001_s13 + $0x18] sm:$0xff] }
  0x98   : > { %989 = vmatpush.bf16.msra.mxu2 %v1577_v29  ;;  %1595 = vmatpush.bf16.msra.mxu3 %v1577_v29 }
  0x99   : > { %v665_v33 = vmax.f32 %v572_v31, 0.0  ;;  %1481 = vmatmul.msk.f32.gmra.mxu0 %vm454_vm0, %v434_v30 }
  0x9b   : > { %v696_v34 = vpack.c.bf16 %v665_v33, %v664_v32  ;;  %v1576_v33 = vld [vmem:[%s2001_s13 + $0x10] sm:$0xff] }
  0x9c   : > { %990 = vmatpush.bf16.msra.mxu2 %v1576_v33  ;;  %1596 = vmatpush.bf16.msra.mxu3 %v1576_v33 }
  0x9d   : > { %788 = vmatmul.bf16.vlgmr.msra.gmra.mxu1 %v696_v34 }
  0x9e   : > { %v574_v35 = vpop.f32.mrf.mxu0 }
  0x9f   : > { %v575_v37 = vadd.f32 %v1953_v27, %v574_v35  ;;  %v1575_v35 = vld [vmem:[%s2001_s13 + $0x8] sm:$0xff] }
  0xa0   : > { %991 = vmatpush.bf16.msra.mxu2 %v1575_v35  ;;  %1597 = vmatpush.bf16.msra.mxu3 %v1575_v35 }
  0xa1   : > { %1482 = vmatmul.msk.f32.gmra.mxu0 %vm454_vm0, %v435_v36  ;;  %v666_v41 = vmax.f32 %v575_v37, 0.0  ;;  %v1574_v36 = vld [vmem:[%s2001_s13] sm:$0xff] }
  0xa4   : > { %992 = vmatpush.bf16.msra.mxu2 %v1574_v36  ;;  %1598 = vmatpush.bf16.msra.mxu3 %v1574_v36 }
  0xa6   : > { %v577_v38 = vpop.f32.mrf.mxu0 }
  0xa7   : > { %v578_v40 = vadd.f32 %v1953_v27, %v577_v38 }
  0xa9   : > { %v667_v42 = vmax.f32 %v578_v40, 0.0  ;;  %1483 = vmatmul.msk.f32.gmra.mxu0 %vm454_vm0, %v436_v39 }
  0xab   : > { %v697_v43 = vpack.c.bf16 %v667_v42, %v666_v41 }
  0xad   : > { %793 = vmatmul.bf16.gmra.mxu1 %v697_v43 }
  0xae   : > { %v580_v44 = vpop.f32.mrf.mxu0 }
  0xaf   : > { %v581_v47 = vadd.f32 %v1953_v27, %v580_v44 }
  0xb1   : > { %1484 = vmatmul.msk.f32.gmra.mxu0 %vm454_vm0, %v437_v45  ;;  %v668_v51 = vmax.f32 %v581_v47, 0.0 }
  0xb6   : > { %v583_v48 = vpop.f32.mrf.mxu0 }
  0xb7   : > { %v584_v50 = vadd.f32 %v1953_v27, %v583_v48 }
  0xb9   : > { %v669_v52 = vmax.f32 %v584_v50, 0.0  ;;  %1485 = vmatmul.msk.f32.gmra.mxu0 %vm454_vm0, %v438_v49 }
  0xbb   : > { %v698_v54 = vpack.c.bf16 %v669_v52, %v668_v51  ;;  %v2024_v51 = vld [vmem:[%s398_s18] ss:$0 sm:$0xff] }
  0xbd   : > { %798 = vmatmul.bf16.gmra.mxu1 %v698_v54 }
  0xbe   : > { %v586_v55 = vpop.f32.mrf.mxu0 }
  0xbf   : > { %v587_v58 = vadd.f32 %v1953_v27, %v586_v55 }
  0xc1   : > { %1486 = vmatmul.msk.f32.gmra.mxu0 %vm454_vm0, %v439_v56  ;;  %v670_v62 = vmax.f32 %v587_v58, 0.0 }
  0xc6   : > { %v589_v59 = vpop.f32.mrf.mxu0 }
  0xc7   : > { %v590_v61 = vadd.f32 %v1953_v27, %v589_v59 }
  0xc9   : > { %v671_v63 = vmax.f32 %v590_v61, 0.0  ;;  %1487 = vmatmul.msk.f32.gmra.mxu0 %vm454_vm0, %v440_v60 }
  0xcb   : > { %v699_v1 = vpack.c.bf16 %v671_v63, %v670_v62 }
  0xcd   : > { %803 = vmatmul.bf16.gmra.mxu1 %v699_v1 }
  0xce   : > { %v592_v2 = vpop.f32.mrf.mxu0 }
  0xcf   : > { %v593_v5 = vadd.f32 %v1953_v27, %v592_v2 }
  0xd1   : > { %1488 = vmatmul.msk.f32.gmra.mxu0 %vm454_vm0, %v441_v3  ;;  %v672_v9 = vmax.f32 %v593_v5, 0.0 }
  0xd6   : > { %v595_v6 = vpop.f32.mrf.mxu0 }
  0xd7   : > { %v596_v8 = vadd.f32 %v1953_v27, %v595_v6 }
  0xd9   : > { %v673_v10 = vmax.f32 %v596_v8, 0.0  ;;  %1489 = vmatmul.msk.f32.gmra.mxu0 %vm454_vm0, %v442_v7 }
  0xdb   : > { %v700_v12 = vpack.c.bf16 %v673_v10, %v672_v9 }
  0xdd   : > { %808 = vmatmul.bf16.gmra.mxu1 %v700_v12 }
  0xde   : > { %v598_v13 = vpop.f32.mrf.mxu0 }
  0xdf   : > { %v599_v14 = vadd.f32 %v1953_v27, %v598_v13 }
  0xe1   : > { %v674_v18 = vmax.f32 %v599_v14, 0.0 }
  0xe6   : > { %v601_v15 = vpop.f32.mrf.mxu0 }
  0xe7   : > { %v602_v16 = vadd.f32 %v1953_v27, %v601_v15 }
  0xe9   : > { %v675_v19 = vmax.f32 %v602_v16, 0.0 }
  0xeb   : > { %v701_v20 = vpack.c.bf16 %v675_v19, %v674_v18 }
  0xed   : > { %813 = vmatmul.bf16.gmra.mxu1 %v701_v20 }
  0xee   : > { %v604_v22 = vpop.f32.mrf.mxu0 }
  0xef   : > { %v605_v25 = vadd.f32 %v1953_v27, %v604_v22 }
  0xf1   : > { %v676_v30 = vmax.f32 %v605_v25, 0.0 }
  0xf6   : > { %v607_v26 = vpop.f32.mrf.mxu0 }
  0xf7   : > { %v608_v28 = vadd.f32 %v1953_v27, %v607_v26 }
  0xf9   : > { %v677_v31 = vmax.f32 %v608_v28, 0.0 }
  0xfb   : > { %v702_v32 = vpack.c.bf16 %v677_v31, %v676_v30 }
  0xfd   : > { %818 = vmatmul.bf16.gmra.mxu1 %v702_v32  ;;  %v646_v32 = vpop.f32.mrf.mxu3 }
  0xfe   : > { %v610_v34 = vpop.f32.mrf.mxu0 }
  0xff   : > { %v611_v37 = vadd.f32 %v1953_v27, %v610_v34 }
 0x101   : > { %v678_v40 = vmax.f32 %v611_v37, 0.0 }
 0x106   : > { %v613_v38 = vpop.f32.mrf.mxu0 }
 0x107   : > { %v614_v39 = vadd.f32 %v1953_v27, %v613_v38 }
 0x109   : > { %v679_v41 = vmax.f32 %v614_v39, 0.0 }
 0x10b   : > { %v703_v42 = vpack.c.bf16 %v679_v41, %v678_v40 }
 0x10d   : > { %823 = vmatmul.bf16.gmra.mxu1 %v703_v42  ;;  %v649_v42 = vpop.f32.mrf.mxu3 }
 0x10e   : > { %v616_v43 = vpop.f32.mrf.mxu0 }
 0x10f   : > { %v617_v44 = vadd.f32 %v1953_v27, %v616_v43 }
 0x111   : > { %v680_v47 = vmax.f32 %v617_v44, 0.0 }
 0x116   : > { %v619_v45 = vpop.f32.mrf.mxu0 }
 0x117   : > { %v620_v46 = vadd.f32 %v1953_v27, %v619_v45 }
 0x119   : > { %v681_v48 = vmax.f32 %v620_v46, 0.0 }
 0x11a   : > { %v789_v49 = vpop.f32.mrf.mxu1 }
 0x11b   : > { %v704_v50 = vpack.c.bf16 %v681_v48, %v680_v47  ;;  %v790_v53 = vadd.f32 %v2024_v51, %v789_v49  ;;  %v652_v49 = vpop.f32.mrf.mxu3 }
 0x11d   : > { %828 = vmatmul.bf16.gmra.mxu1 %v704_v50  ;;  %v869_v56 = vmax.f32 %v790_v53, 0.0  ;;  %v647_v50 = vadd.f32 %v1953_v27, %v646_v32 }
 0x11e   : > { %v622_v52 = vpop.f32.mrf.mxu0 }
 0x11f   : > { %v623_v57 = vadd.f32 %v1953_v27, %v622_v52  ;;  %v650_v52 = vadd.f32 %v1953_v27, %v649_v42 }
 0x121   : > { %v682_v62 = vmax.f32 %v623_v57, 0.0  ;;  %v691_v57 = vmax.f32 %v650_v52, 0.0 }
 0x122   : > { %v791_v54 = vpop.f32.mrf.mxu1 }
 0x123   : > { %v792_v55 = vadd.f32 %v2024_v51, %v791_v54 }
 0x125   : > { %v870_v58 = vmax.f32 %v792_v55, 0.0 }
 0x126   : > { %v625_v59 = vpop.f32.mrf.mxu0 }
 0x127   : > { %v626_v60 = vadd.f32 %v1953_v27, %v625_v59  ;;  %v901_v61 = vpack.c.bf16 %v870_v58, %v869_v56  ;;  %v690_v56 = vmax.f32 %v647_v50, 0.0 }
 0x129   : > { %v683_v63 = vmax.f32 %v626_v60, 0.0  ;;  %993 = vmatmul.bf16.vlgmr.msra.gmra.mxu2 %v901_v61  ;;  %v709_v60 = vpack.c.bf16 %v691_v57, %v690_v56  ;;  %v655_v61 = vpop.f32.mrf.mxu3 }
 0x12a   : > { %v794_v0 = vpop.f32.mrf.mxu1 }
 0x12b   : > { %v705_v1 = vpack.c.bf16 %v683_v63, %v682_v62  ;;  %v795_v3 = vadd.f32 %v2024_v51, %v794_v0  ;;  %v653_v0 = vadd.f32 %v1953_v27, %v652_v49 }
 0x12d   : > { %833 = vmatmul.bf16.gmra.mxu1 %v705_v1  ;;  %v871_v6 = vmax.f32 %v795_v3, 0.0  ;;  %v656_v1 = vadd.f32 %v1953_v27, %v655_v61 }
 0x12e   : > { %v628_v2 = vpop.f32.mrf.mxu0 }
 0x12f   : > { %v629_v7 = vadd.f32 %v1953_v27, %v628_v2 }
 0x131   : > { %v684_v12 = vmax.f32 %v629_v7, 0.0  ;;  %v693_v7 = vmax.f32 %v656_v1, 0.0 }
 0x132   : > { %v796_v4 = vpop.f32.mrf.mxu1 }
 0x133   : > { %v797_v5 = vadd.f32 %v2024_v51, %v796_v4 }
 0x135   : > { %v872_v8 = vmax.f32 %v797_v5, 0.0  ;;  %v658_v5 = vpop.f32.mrf.mxu3 }
 0x136   : > { %v631_v9 = vpop.f32.mrf.mxu0 }
 0x137   : > { %v632_v10 = vadd.f32 %v1953_v27, %v631_v9  ;;  %v902_v11 = vpack.c.bf16 %v872_v8, %v871_v6  ;;  %v692_v6 = vmax.f32 %v653_v0, 0.0 }
 0x139   : > { %v685_v13 = vmax.f32 %v632_v10, 0.0  ;;  %998 = vmatmul.bf16.gmra.mxu2 %v902_v11  ;;  %v710_v10 = vpack.c.bf16 %v693_v7, %v692_v6 }
 0x13a   : > { %v799_v14 = vpop.f32.mrf.mxu1 }
 0x13b   : > { %v706_v15 = vpack.c.bf16 %v685_v13, %v684_v12  ;;  %v800_v17 = vadd.f32 %v2024_v51, %v799_v14  ;;  %v659_v14 = vadd.f32 %v1953_v27, %v658_v5 }
 0x13d   : > { %838 = vmatmul.bf16.gmra.mxu1 %v706_v15  ;;  %v873_v20 = vmax.f32 %v800_v17, 0.0  ;;  %v661_v11 = vpop.f32.mrf.mxu3 }
 0x13e   : > { %v634_v16 = vpop.f32.mrf.mxu0  ;;  %v662_v15 = vadd.f32 %v1953_v27, %v661_v11 }
 0x13f   : > { %v635_v21 = vadd.f32 %v1953_v27, %v634_v16 }
 0x141   : > { %v686_v26 = vmax.f32 %v635_v21, 0.0 }
 0x142   : > { %v801_v18 = vpop.f32.mrf.mxu1 }
 0x143   : > { %v802_v19 = vadd.f32 %v2024_v51, %v801_v18 }
 0x145   : > { %v874_v22 = vmax.f32 %v802_v19, 0.0  ;;  %v694_v19 = vmax.f32 %v659_v14, 0.0 }
 0x146   : > { %v637_v23 = vpop.f32.mrf.mxu0 }
 0x147   : > { %v638_v24 = vadd.f32 %v1953_v27, %v637_v23  ;;  %v903_v25 = vpack.c.bf16 %v874_v22, %v873_v20  ;;  %v695_v20 = vmax.f32 %v662_v15, 0.0 }
 0x149   : > { %v687_v28 = vmax.f32 %v638_v24, 0.0  ;;  %1003 = vmatmul.bf16.gmra.mxu2 %v903_v25  ;;  %v711_v23 = vpack.c.bf16 %v695_v20, %v694_v19 }
 0x14a   : > { %v804_v29 = vpop.f32.mrf.mxu1 }
 0x14b   : > { %v707_v30 = vpack.c.bf16 %v687_v28, %v686_v26  ;;  %v805_v33 = vadd.f32 %v2024_v51, %v804_v29 }
 0x14d   : > { %843 = vmatmul.bf16.gmra.mxu1 %v707_v30  ;;  %v875_v36 = vmax.f32 %v805_v33, 0.0 }
 0x14e   : > { %v640_v31 = vpop.f32.mrf.mxu0 }
 0x14f   : > { %v641_v37 = vadd.f32 %v1953_v27, %v640_v31 }
 0x151   : > { %v688_v43 = vmax.f32 %v641_v37, 0.0 }
 0x152   : > { %v806_v34 = vpop.f32.mrf.mxu1 }
 0x153   : > { %v807_v35 = vadd.f32 %v2024_v51, %v806_v34 }
 0x155   : > { %v876_v38 = vmax.f32 %v807_v35, 0.0 }
 0x156   : > { %v643_v39 = vpop.f32.mrf.mxu0 }
 0x157   : > { %v644_v40 = vadd.f32 %v1953_v27, %v643_v39  ;;  %v904_v41 = vpack.c.bf16 %v876_v38, %v875_v36 }
 0x159   : > { %v689_v44 = vmax.f32 %v644_v40, 0.0  ;;  %1008 = vmatmul.bf16.gmra.mxu2 %v904_v41 }
 0x15a   : > { %v809_v45 = vpop.f32.mrf.mxu1 }
 0x15b   : > { %v708_v46 = vpack.c.bf16 %v689_v44, %v688_v43  ;;  %v810_v47 = vadd.f32 %v2024_v51, %v809_v45 }
 0x15d   : > { %848 = vmatmul.bf16.vlgmr.msrb.gmra.mxu3 %v708_v46  ;;  %v877_v54 = vmax.f32 %v810_v47, 0.0 }
 0x162   : > { %v811_v48 = vpop.f32.mrf.mxu1 }
 0x163   : > { %v812_v53 = vadd.f32 %v2024_v51, %v811_v48 }
 0x165   : > { %v878_v55 = vmax.f32 %v812_v53, 0.0 }
 0x167   : > { %v905_v58 = vpack.c.bf16 %v878_v55, %v877_v54 }
 0x169   : > { %1013 = vmatmul.bf16.gmra.mxu2 %v905_v58 }
 0x16a   : > { %v814_v59 = vpop.f32.mrf.mxu1 }
 0x16b   : > { %v815_v62 = vadd.f32 %v2024_v51, %v814_v59 }
 0x16d   : > { %853 = vmatmul.bf16.gmra.mxu3 %v709_v60  ;;  %v879_v3 = vmax.f32 %v815_v62, 0.0 }
 0x172   : > { %v816_v63 = vpop.f32.mrf.mxu1 }
 0x173   : > { %v817_v2 = vadd.f32 %v2024_v51, %v816_v63 }
 0x175   : > { %v880_v4 = vmax.f32 %v817_v2, 0.0 }
 0x177   : > { %v906_v8 = vpack.c.bf16 %v880_v4, %v879_v3 }
 0x179   : > { %1018 = vmatmul.bf16.gmra.mxu2 %v906_v8 }
 0x17a   : > { %v819_v9 = vpop.f32.mrf.mxu1 }
 0x17b   : > { %v820_v12 = vadd.f32 %v2024_v51, %v819_v9 }
 0x17d   : > { %858 = vmatmul.bf16.gmra.mxu3 %v710_v10  ;;  %v881_v17 = vmax.f32 %v820_v12, 0.0 }
 0x182   : > { %v821_v13 = vpop.f32.mrf.mxu1 }
 0x183   : > { %v822_v16 = vadd.f32 %v2024_v51, %v821_v13 }
 0x185   : > { %v882_v18 = vmax.f32 %v822_v16, 0.0 }
 0x187   : > { %v907_v21 = vpack.c.bf16 %v882_v18, %v881_v17 }
 0x189   : > { %1023 = vmatmul.bf16.gmra.mxu2 %v907_v21 }
 0x18a   : > { %v824_v22 = vpop.f32.mrf.mxu1 }
 0x18b   : > { %v825_v24 = vadd.f32 %v2024_v51, %v824_v22 }
 0x18d   : > { %863 = vmatmul.bf16.gmra.mxu3 %v711_v23  ;;  %v883_v28 = vmax.f32 %v825_v24, 0.0 }
 0x192   : > { %v826_v25 = vpop.f32.mrf.mxu1 }
 0x193   : > { %v827_v26 = vadd.f32 %v2024_v51, %v826_v25 }
 0x195   : > { %v884_v29 = vmax.f32 %v827_v26, 0.0 }
 0x197   : > { %v908_v30 = vpack.c.bf16 %v884_v29, %v883_v28 }
 0x199   : > { %1028 = vmatmul.bf16.gmra.mxu2 %v908_v30 }
 0x19a   : > { %v829_v27 = vpop.f32.mrf.mxu1 }
 0x19b   : > { %v830_v31 = vadd.f32 %v2024_v51, %v829_v27 }
 0x19d   : > { %v885_v34 = vmax.f32 %v830_v31, 0.0 }
 0x1a2   : > { %v831_v32 = vpop.f32.mrf.mxu1 }
 0x1a3   : > { %v832_v33 = vadd.f32 %v2024_v51, %v831_v32 }
 0x1a5   : > { %v886_v35 = vmax.f32 %v832_v33, 0.0 }
 0x1a7   : > { %v909_v36 = vpack.c.bf16 %v886_v35, %v885_v34 }
 0x1a9   : > { %1033 = vmatmul.bf16.gmra.mxu2 %v909_v36 }
 0x1aa   : > { %v834_v37 = vpop.f32.mrf.mxu1 }
 0x1ab   : > { %v835_v39 = vadd.f32 %v2024_v51, %v834_v37  ;;  %v2107_v37 = vld [vmem:[%s406_s21] ss:$0 sm:$0xff] }
 0x1ac   : > { %v2058_v38 = vpop.f32.mrf.mxu2 }
 0x1ad   : > { %v887_v43 = vmax.f32 %v835_v39, 0.0 }
 0x1b2   : > { %v836_v40 = vpop.f32.mrf.mxu1 }
 0x1b3   : > { %v837_v41 = vadd.f32 %v2024_v51, %v836_v40  ;;  %v995_v40 = vadd.f32 %v2107_v37, %v2058_v38 }
 0x1b4   : > { %v2062_v42 = vpop.f32.mrf.mxu2 }
 0x1b5   : > { %v888_v44 = vmax.f32 %v837_v41, 0.0 }
 0x1b7   : > { %v910_v45 = vpack.c.bf16 %v888_v44, %v887_v43  ;;  %v1074_v43 = vsub.f32 0.0, %v995_v40 }
 0x1b9   : > { %1038 = vmatmul.bf16.gmra.mxu2 %v910_v45  ;;  %v1106_v44 = vmul.f32 1.442695, %v1074_v43 }
 0x1ba   : > { %v839_v46 = vpop.f32.mrf.mxu1 }
 0x1bb   : > { %v840_v48 = vadd.f32 %v2024_v51, %v839_v46  ;;  %1663 = vpow2.f32 %v1106_v44 }
 0x1bc   : > { %v2064_v47 = vpop.f32.mrf.mxu2 }
 0x1bd   : > { %v889_v53 = vmax.f32 %v840_v48, 0.0 }
 0x1c2   : > { %v841_v49 = vpop.f32.mrf.mxu1 }
 0x1c3   : > { %v842_v50 = vadd.f32 %v2024_v51, %v841_v49 }
 0x1c4   : > { %v2068_v52 = vpop.f32.mrf.mxu2 }
 0x1c5   : > { %v890_v54 = vmax.f32 %v842_v50, 0.0 }
 0x1c7   : > { %v911_v55 = vpack.c.bf16 %v890_v54, %v889_v53  ;;  %v1000_v53 = vadd.f32 %v2107_v37, %v2064_v47 }
 0x1c9   : > { %1043 = vmatmul.bf16.gmra.mxu2 %v911_v55  ;;  %v1664_v55 = vpop.eup %1663 }
 0x1ca   : > { %v844_v56 = vpop.f32.mrf.mxu1 }
 0x1cb   : > { %v845_v58 = vadd.f32 %v2024_v51, %v844_v56  ;;  %v1076_v56 = vsub.f32 0.0, %v1000_v53 }
 0x1cc   : > { %v2070_v57 = vpop.f32.mrf.mxu2 }
 0x1cd   : > { %v891_v62 = vmax.f32 %v845_v58, 0.0 }
 0x1d2   : > { %v846_v59 = vpop.f32.mrf.mxu1 }
 0x1d3   : > { %v847_v60 = vadd.f32 %v2024_v51, %v846_v59  ;;  %v1170_v59 = vadd.f32 1.0, %v1664_v55 }
 0x1d4   : > { %v2074_v61 = vpop.f32.mrf.mxu2 }
 0x1d5   : > { %v892_v63 = vmax.f32 %v847_v60, 0.0 }
 0x1d7   : > { %v912_v0 = vpack.c.bf16 %v892_v63, %v891_v62  ;;  %v1110_v62 = vmul.f32 1.442695, %v1076_v56  ;;  %v1002_v63 = vadd.f32 %v2107_v37, %v2068_v52 }
 0x1d9   : > { %1048 = vmatmul.bf16.gmra.mxu2 %v912_v0 }
 0x1dc   : > { %v2076_v1 = vpop.f32.mrf.mxu2 }
 0x1e0   : > { %v849_v2 = vpop.f32.mrf.mxu3 }
 0x1e1   : > { %v850_v4 = vadd.f32 %v2024_v51, %v849_v2 }
 0x1e3   : > { %v893_v7 = vmax.f32 %v850_v4, 0.0 }
 0x1e4   : > { %v2078_v3 = vpop.f32.mrf.mxu2 }
 0x1e8   : > { %v851_v5 = vpop.f32.mrf.mxu3 }
 0x1e9   : > { %v852_v6 = vadd.f32 %v2024_v51, %v851_v5  ;;  %v1077_v5 = vsub.f32 0.0, %v1002_v63 }
 0x1eb   : > { %v894_v8 = vmax.f32 %v852_v6, 0.0 }
 0x1ec   : > { %v2082_v9 = vpop.f32.mrf.mxu2 }
 0x1ed   : > { %v913_v10 = vpack.c.bf16 %v894_v8, %v893_v7 }
 0x1ef   : > { %1053 = vmatmul.bf16.vlgmr.msra.gmra.mxu3 %v913_v10 }
 0x1f0   : > { %v854_v11 = vpop.f32.mrf.mxu3 }
 0x1f1   : > { %v855_v13 = vadd.f32 %v2024_v51, %v854_v11 }
 0x1f3   : > { %v895_v16 = vmax.f32 %v855_v13, 0.0  ;;  %v1112_v13 = vmul.f32 1.442695, %v1077_v5 }
 0x1f4   : > { %v2084_v12 = vpop.f32.mrf.mxu2 }
 0x1f8   : > { %v856_v14 = vpop.f32.mrf.mxu3 }
 0x1f9   : > { %v857_v15 = vadd.f32 %v2024_v51, %v856_v14  ;;  %v1005_v14 = vadd.f32 %v2107_v37, %v2070_v57  ;;  %v1007_v57 = vadd.f32 %v2107_v37, %v2074_v61  ;;  %v1010_v61 = vadd.f32 %v2107_v37, %v2076_v1 }
 0x1fb   : > { %v896_v17 = vmax.f32 %v857_v15, 0.0  ;;  %v1079_v40 = vsub.f32 0.0, %v1007_v57  ;;  %v1080_v56 = vsub.f32 0.0, %v1010_v61 }
 0x1fc   : > { %v2088_v18 = vpop.f32.mrf.mxu2 }
 0x1fd   : > { %v914_v19 = vpack.c.bf16 %v896_v17, %v895_v16  ;;  %v1118_v63 = vmul.f32 1.442695, %v1080_v56 }
 0x1ff   : > { %1058 = vmatmul.bf16.gmra.mxu3 %v914_v19 }
 0x200   : > { %v859_v20 = vpop.f32.mrf.mxu3 }
 0x201   : > { %v860_v22 = vadd.f32 %v2024_v51, %v859_v20 }
 0x203   : > { %v897_v25 = vmax.f32 %v860_v22, 0.0  ;;  %v1078_v22 = vsub.f32 0.0, %v1005_v14 }
 0x204   : > { %v2090_v21 = vpop.f32.mrf.mxu2 }
 0x208   : > { %v861_v23 = vpop.f32.mrf.mxu3 }
 0x209   : > { %v862_v24 = vadd.f32 %v2024_v51, %v861_v23 }
 0x20b   : > { %v898_v26 = vmax.f32 %v862_v24, 0.0 }
 0x20c   : > { %v2094_v28 = vpop.f32.mrf.mxu2 }
 0x20d   : > { %v915_v29 = vpack.c.bf16 %v898_v26, %v897_v25 }
 0x20f   : > { %1063 = vmatmul.bf16.gmra.mxu3 %v915_v29 }
 0x210   : > { %v864_v30 = vpop.f32.mrf.mxu3 }
 0x211   : > { %v865_v31 = vadd.f32 %v2024_v51, %v864_v30  ;;  %v1114_v30 = vmul.f32 1.442695, %v1078_v22 }
 0x213   : > { %v899_v34 = vmax.f32 %v865_v31, 0.0 }
 0x214   : > { %v2096_v27 = vpop.f32.mrf.mxu2 }
 0x218   : > { %v866_v32 = vpop.f32.mrf.mxu3 }
 0x219   : > { %v867_v33 = vadd.f32 %v2024_v51, %v866_v32  ;;  %v997_v51 = vadd.f32 %v2107_v37, %v2062_v42 }
 0x21b   : > { %v900_v35 = vmax.f32 %v867_v33, 0.0  ;;  %v1075_v46 = vsub.f32 0.0, %v997_v51 }
 0x21c   : > { %v2100_v36 = vpop.f32.mrf.mxu2 }
 0x21d   : > { %v916_v39 = vpack.c.bf16 %v900_v35, %v899_v34  ;;  %v1108_v50 = vmul.f32 1.442695, %v1075_v46 }
 0x21f   : > { %1068 = vmatmul.bf16.gmra.mxu3 %v916_v39 }
 0x224   : > { %v2111_v41 = vpop.f32.mrf.mxu2 }
 0x22c   : > { %v1034_v45 = vpop.f32.mrf.mxu2 }
 0x22d   : > { %v1035_v48 = vadd.f32 %v2107_v37, %v1034_v45 }
 0x22f   : > { %v1090_v49 = vsub.f32 0.0, %v1035_v48  ;;  %v1116_v48 = vmul.f32 1.442695, %v1079_v40  ;;  %v1017_v40 = vadd.f32 %v2107_v37, %v2084_v12 }
 0x231   : > { %v1138_v54 = vmul.f32 1.442695, %v1090_v49 }
 0x233   : > { %1665 = vpow2.f32 %v1138_v54 }
 0x234   : > { %v1036_v38 = vpop.f32.mrf.mxu2  ;;  %1667 = vpow2.f32 %v1108_v50 }
 0x235   : > { %v1037_v58 = vadd.f32 %v2107_v37, %v1036_v38  ;;  %1669 = vrcp.f32 %v1170_v59 }
 0x237   : > { %v1091_v42 = vsub.f32 0.0, %v1037_v58 }
 0x239   : > { %v1666_v60 = vpop.eup %1665  ;;  %v1140_v0 = vmul.f32 1.442695, %v1091_v42 }
 0x23a   : > { %v1186_v2 = vadd.f32 1.0, %v1666_v60  ;;  %v1668_v4 = vpop.eup %1667 }
 0x23b   : > { %1671 = vpow2.f32 %v1140_v0  ;;  %v1171_v7 = vadd.f32 1.0, %v1668_v4  ;;  %v1670_v10 = vpop.eup %1669 }
 0x23c   : > { %1673 = vrcp.f32 %v1186_v2  ;;  %v1039_v47 = vpop.f32.mrf.mxu2  ;;  %v1012_v2 = vadd.f32 %v2107_v37, %v2078_v3 }
 0x23d   : > { %1675 = vpow2.f32 %v1110_v62  ;;  %v1040_v6 = vadd.f32 %v2107_v37, %v1039_v47 }
 0x23e   : > { %1677 = vrcp.f32 %v1171_v7 }
 0x23f   : > { %v1092_v8 = vsub.f32 0.0, %v1040_v6 }
 0x241   : > { %v1672_v11 = vpop.eup %1671  ;;  %v1142_v52 = vmul.f32 1.442695, %v1092_v8 }
 0x242   : > { %v1674_v15 = vpop.eup %1673  ;;  %v1187_v16 = vadd.f32 1.0, %v1672_v11 }
 0x243   : > { %v1676_v17 = vpop.eup %1675  ;;  %1679 = vpow2.f32 %v1142_v52  ;;  %v1623_v19 = vpack.i.bf16 %v1674_v15, %v1670_v10  ;;  %v1081_v10 = vsub.f32 0.0, %v1012_v2 }
 0x244   : > { %1681 = vrcp.f32 %v1187_v16  ;;  %v1041_v20 = vpop.f32.mrf.mxu2  ;;  %v1172_v24 = vadd.f32 1.0, %v1676_v17  ;;  %v1678_v26 = vpop.eup %1677 }
 0x245   : > { %1683 = vpow2.f32 %v1112_v13  ;;  %v1042_v23 = vadd.f32 %v2107_v37, %v1041_v20  ;;  %1624 = vxpose.xlu0.b32.start [1/16] (narrow) %v1623_v19, 8  ;;  %v1120_v16 = vmul.f32 1.442695, %v1081_v10 }
 0x246   : > { %1685 = vrcp.f32 %v1172_v24  ;;  %v1015_v24 = vadd.f32 %v2107_v37, %v2082_v9 }
 0x247   : > { %v1093_v25 = vsub.f32 0.0, %v1042_v23 }
 0x249   : > { %v1680_v29 = vpop.eup %1679  ;;  %v1144_v31 = vmul.f32 1.442695, %v1093_v25 }
 0x24a   : > { %v1682_v32 = vpop.eup %1681  ;;  %v1188_v33 = vadd.f32 1.0, %v1680_v29 }
 0x24b   : > { %v1684_v34 = vpop.eup %1683  ;;  %1687 = vpow2.f32 %v1144_v31  ;;  %v1625_v35 = vpack.i.bf16 %v1682_v32, %v1678_v26  ;;  %v1082_v31 = vsub.f32 0.0, %v1015_v24 }
 0x24c   : > { %1689 = vrcp.f32 %v1188_v33  ;;  %v1044_v39 = vpop.f32.mrf.mxu2  ;;  %v1173_v44 = vadd.f32 1.0, %v1684_v34  ;;  %v1686_v45 = vpop.eup %1685 }
 0x24d   : > { %1691 = vpow2.f32 %v1114_v30  ;;  %v1045_v43 = vadd.f32 %v2107_v37, %v1044_v39  ;;  %1626 = vxpose.xlu0.b32.cont [2/16] (narrow) %v1625_v35, 8  ;;  %v1122_v35 = vmul.f32 1.442695, %v1082_v31 }
 0x24e   : > { %1693 = vrcp.f32 %v1173_v44 }
 0x24f   : > { %v1094_v51 = vsub.f32 0.0, %v1045_v43 }
 0x251   : > { %v1688_v46 = vpop.eup %1687  ;;  %v1146_v49 = vmul.f32 1.442695, %v1094_v51 }
 0x252   : > { %v1690_v50 = vpop.eup %1689  ;;  %v1189_v53 = vadd.f32 1.0, %v1688_v46  ;;  %v1083_v46 = vsub.f32 0.0, %v1017_v40 }
 0x253   : > { %v1692_v54 = vpop.eup %1691  ;;  %1695 = vpow2.f32 %v1146_v49  ;;  %v1627_v55 = vpack.i.bf16 %v1690_v50, %v1686_v45 }
 0x254   : > { %1697 = vrcp.f32 %v1189_v53  ;;  %v1046_v38 = vpop.f32.mrf.mxu2  ;;  %v1174_v59 = vadd.f32 1.0, %v1692_v54  ;;  %v1694_v60 = vpop.eup %1693  ;;  %v1124_v50 = vmul.f32 1.442695, %v1083_v46  ;;  %v1020_v53 = vadd.f32 %v2107_v37, %v2088_v18 }
 0x255   : > { %1699 = vpow2.f32 %v1116_v48  ;;  %v1047_v58 = vadd.f32 %v2107_v37, %v1046_v38  ;;  %1628 = vxpose.xlu0.b32.cont [3/16] (narrow) %v1627_v55, 8 }
 0x256   : > { %1701 = vrcp.f32 %v1174_v59 }
 0x257   : > { %v1095_v42 = vsub.f32 0.0, %v1047_v58  ;;  %v1084_v58 = vsub.f32 0.0, %v1020_v53 }
 0x259   : > { %v1696_v62 = vpop.eup %1695  ;;  %v1148_v1 = vmul.f32 1.442695, %v1095_v42 }
 0x25a   : > { %v1698_v0 = vpop.eup %1697  ;;  %v1190_v4 = vadd.f32 1.0, %v1696_v62 }
 0x25b   : > { %v1700_v47 = vpop.eup %1699  ;;  %1703 = vpow2.f32 %v1148_v1  ;;  %v1629_v5 = vpack.i.bf16 %v1698_v0, %v1694_v60  ;;  %v1126_v1 = vmul.f32 1.442695, %v1084_v58  ;;  %v1022_v0 = vadd.f32 %v2107_v37, %v2090_v21 }
 0x25c   : > { %1705 = vrcp.f32 %v1190_v4  ;;  %v1049_v6 = vpop.f32.mrf.mxu2  ;;  %v1175_v8 = vadd.f32 1.0, %v1700_v47  ;;  %v1702_v13 = vpop.eup %1701 }
 0x25d   : > { %1707 = vpow2.f32 %v1118_v63  ;;  %v1050_v7 = vadd.f32 %v2107_v37, %v1049_v6  ;;  %1630 = vxpose.xlu0.b32.cont [4/16] (narrow) %v1629_v5, 8  ;;  %v1085_v5 = vsub.f32 0.0, %v1022_v0 }
 0x25e   : > { %1709 = vrcp.f32 %v1175_v8 }
 0x25f   : > { %v1096_v11 = vsub.f32 0.0, %v1050_v7 }
 0x261   : > { %v1704_v14 = vpop.eup %1703  ;;  %v1150_v52 = vmul.f32 1.442695, %v1096_v11 }
 0x262   : > { %v1706_v15 = vpop.eup %1705  ;;  %v1191_v3 = vadd.f32 1.0, %v1704_v14  ;;  %v1025_v14 = vadd.f32 %v2107_v37, %v2094_v28  ;;  %v1027_v28 = vadd.f32 %v2107_v37, %v2096_v27  ;;  %v1030_v27 = vadd.f32 %v2107_v37, %v2100_v36 }
 0x263   : > { %v1708_v17 = vpop.eup %1707  ;;  %1711 = vpow2.f32 %v1150_v52  ;;  %v1631_v19 = vpack.i.bf16 %v1706_v15, %v1702_v13  ;;  %v1128_v13 = vmul.f32 1.442695, %v1085_v5 }
 0x264   : > { %1713 = vrcp.f32 %v1191_v3  ;;  %v1051_v20 = vpop.f32.mrf.mxu2  ;;  %v1176_v23 = vadd.f32 1.0, %v1708_v17  ;;  %v1710_v26 = vpop.eup %1709 }
 0x265   : > { %v1052_v22 = vadd.f32 %v2107_v37, %v1051_v20  ;;  %1632 = vxpose.xlu0.b32.cont [5/16] (narrow) %v1631_v19, 8  ;;  %1715 = vpow2.f32 %v1120_v16  ;;  %v1086_v19 = vsub.f32 0.0, %v1025_v14 }
 0x266   : > { %1717 = vrcp.f32 %v1176_v23 }
 0x267   : > { %v1097_v25 = vsub.f32 0.0, %v1052_v22 }
 0x269   : > { %v1712_v29 = vpop.eup %1711  ;;  %v1152_v30 = vmul.f32 1.442695, %v1097_v25 }
 0x26a   : > { %v1714_v57 = vpop.eup %1713  ;;  %v1192_v32 = vadd.f32 1.0, %v1712_v29 }
 0x26b   : > { %1719 = vpow2.f32 %v1152_v30  ;;  %v1633_v33 = vpack.i.bf16 %v1714_v57, %v1710_v26  ;;  %v1716_v34 = vpop.eup %1715  ;;  %v1130_v26 = vmul.f32 1.442695, %v1086_v19 }
 0x26c   : > { %1721 = vrcp.f32 %v1192_v32  ;;  %v1177_v39 = vadd.f32 1.0, %v1716_v34  ;;  %v1718_v43 = vpop.eup %1717  ;;  %v1087_v34 = vsub.f32 0.0, %v1027_v28 }
 0x26d   : > { %1634 = vxpose.xlu0.b32.cont [6/16] (narrow) %v1633_v33, 8  ;;  %1723 = vpow2.f32 %v1122_v35 }
 0x26e   : > { %1725 = vrcp.f32 %v1177_v39 }
 0x271   : > { %v1720_v9 = vpop.eup %1719 }
 0x272   : > { %v1722_v44 = vpop.eup %1721  ;;  %v1193_v51 = vadd.f32 1.0, %v1720_v9  ;;  %v1054_v45 = vpop.f32.mrf.mxu3 }
 0x273   : > { %v1055_v48 = vadd.f32 %v2107_v37, %v1054_v45  ;;  %v1635_v61 = vpack.i.bf16 %v1722_v44, %v1718_v43  ;;  %v1724_v12 = vpop.eup %1723  ;;  %v1132_v44 = vmul.f32 1.442695, %v1087_v34 }
 0x274   : > { %1727 = vrcp.f32 %v1193_v51  ;;  %v1726_v55 = vpop.eup %1725  ;;  %v1178_v60 = vadd.f32 1.0, %v1724_v12 }
 0x275   : > { %v1098_v49 = vsub.f32 0.0, %v1055_v48  ;;  %1636 = vxpose.xlu0.b32.cont [7/16] (narrow) %v1635_v61, 8 }
 0x277   : > { %v1154_v54 = vmul.f32 1.442695, %v1098_v49 }
 0x279   : > { %1729 = vpow2.f32 %v1154_v54 }
 0x27a   : > { %v1728_v38 = vpop.eup %1727  ;;  %v1056_v56 = vpop.f32.mrf.mxu3  ;;  %1731 = vpow2.f32 %v1124_v50  ;;  %v1088_v50 = vsub.f32 0.0, %v1030_v27 }
 0x27b   : > { %v1057_v59 = vadd.f32 %v2107_v37, %v1056_v56  ;;  %v1637_v42 = vpack.i.bf16 %v1728_v38, %v1726_v55  ;;  %1733 = vrcp.f32 %v1178_v60 }
 0x27c   : > { %v1134_v56 = vmul.f32 1.442695, %v1088_v50 }
 0x27d   : > { %v1099_v62 = vsub.f32 0.0, %v1057_v59  ;;  %1638 = vxpose.xlu0.b32.cont [8/16] (narrow) %v1637_v42, 8  ;;  %v1032_v59 = vadd.f32 %v2107_v37, %v2111_v41 }
 0x27f   : > { %v1730_v63 = vpop.eup %1729  ;;  %v1156_v18 = vmul.f32 1.442695, %v1099_v62 }
 0x280   : > { %v1194_v2 = vadd.f32 1.0, %v1730_v63  ;;  %v1732_v4 = vpop.eup %1731 }
 0x281   : > { %1735 = vpow2.f32 %v1156_v18  ;;  %v1179_v7 = vadd.f32 1.0, %v1732_v4  ;;  %v1734_v10 = vpop.eup %1733  ;;  %v1089_v18 = vsub.f32 0.0, %v1032_v59 }
 0x282   : > { %1737 = vrcp.f32 %v1194_v2  ;;  %v1059_v47 = vpop.f32.mrf.mxu3 }
 0x283   : > { %1739 = vpow2.f32 %v1126_v1  ;;  %v1060_v6 = vadd.f32 %v2107_v37, %v1059_v47 }
 0x284   : > { %1741 = vrcp.f32 %v1179_v7  ;;  %v1136_v7 = vmul.f32 1.442695, %v1089_v18 }
 0x285   : > { %v1100_v8 = vsub.f32 0.0, %v1060_v6 }
 0x287   : > { %v1736_v11 = vpop.eup %1735  ;;  %v1158_v21 = vmul.f32 1.442695, %v1100_v8 }
 0x288   : > { %v1738_v52 = vpop.eup %1737  ;;  %v1195_v15 = vadd.f32 1.0, %v1736_v11 }
 0x289   : > { %v1740_v16 = vpop.eup %1739  ;;  %1743 = vpow2.f32 %v1158_v21  ;;  %v1639_v3 = vpack.i.bf16 %v1738_v52, %v1734_v10 }
 0x28a   : > { %1745 = vrcp.f32 %v1195_v15  ;;  %v1061_v17 = vpop.f32.mrf.mxu3  ;;  %v1180_v22 = vadd.f32 1.0, %v1740_v16  ;;  %v1742_v24 = vpop.eup %1741 }
 0x28b   : > { %1747 = vpow2.f32 %v1128_v13  ;;  %v1062_v20 = vadd.f32 %v2107_v37, %v1061_v17  ;;  %1640 = vxpose.xlu0.b32.cont [9/16] (narrow) %v1639_v3, 8 }
 0x28c   : > { %1749 = vrcp.f32 %v1180_v22 }
 0x28d   : > { %v1101_v23 = vsub.f32 0.0, %v1062_v20 }
 0x28f   : > { %v1744_v25 = vpop.eup %1743  ;;  %v1160_v29 = vmul.f32 1.442695, %v1101_v23 }
 0x290   : > { %v1746_v30 = vpop.eup %1745  ;;  %v1196_v57 = vadd.f32 1.0, %v1744_v25 }
 0x291   : > { %v1748_v31 = vpop.eup %1747  ;;  %1751 = vpow2.f32 %v1160_v29  ;;  %v1641_v32 = vpack.i.bf16 %v1746_v30, %v1742_v24 }
 0x292   : > { %1753 = vrcp.f32 %v1196_v57  ;;  %v1064_v33 = vpop.f32.mrf.mxu3  ;;  %v1181_v39 = vadd.f32 1.0, %v1748_v31  ;;  %v1750_v43 = vpop.eup %1749 }
 0x293   : > { %1755 = vpow2.f32 %v1130_v26  ;;  %v1065_v35 = vadd.f32 %v2107_v37, %v1064_v33  ;;  %1642 = vxpose.xlu0.b32.cont [10/16] (narrow) %v1641_v32, 8 }
 0x294   : > { %1757 = vrcp.f32 %v1181_v39 }
 0x295   : > { %v1102_v40 = vsub.f32 0.0, %v1065_v35 }
 0x297   : > { %v1752_v9 = vpop.eup %1751  ;;  %v1162_v51 = vmul.f32 1.442695, %v1102_v40 }
 0x298   : > { %v1754_v45 = vpop.eup %1753  ;;  %v1197_v46 = vadd.f32 1.0, %v1752_v9 }
 0x299   : > { %v1756_v48 = vpop.eup %1755  ;;  %1759 = vpow2.f32 %v1162_v51  ;;  %v1643_v61 = vpack.i.bf16 %v1754_v45, %v1750_v43 }
 0x29a   : > { %1761 = vrcp.f32 %v1197_v46  ;;  %v1066_v49 = vpop.f32.mrf.mxu3  ;;  %v1182_v54 = vadd.f32 1.0, %v1756_v48  ;;  %v1758_v55 = vpop.eup %1757 }
 0x29b   : > { %1763 = vpow2.f32 %v1132_v44  ;;  %v1067_v53 = vadd.f32 %v2107_v37, %v1066_v49  ;;  %1644 = vxpose.xlu0.b32.cont [11/16] (narrow) %v1643_v61, 8 }
 0x29c   : > { %1765 = vrcp.f32 %v1182_v54 }
 0x29d   : > { %v1103_v12 = vsub.f32 0.0, %v1067_v53 }
 0x29f   : > { %v1760_v38 = vpop.eup %1759  ;;  %v1164_v36 = vmul.f32 1.442695, %v1103_v12 }
 0x2a0   : > { %v1762_v58 = vpop.eup %1761  ;;  %v1198_v42 = vadd.f32 1.0, %v1760_v38 }
 0x2a1   : > { %v1764_v60 = vpop.eup %1763  ;;  %1767 = vpow2.f32 %v1164_v36  ;;  %v1645_v62 = vpack.i.bf16 %v1762_v58, %v1758_v55 }
 0x2a2   : > { %1769 = vrcp.f32 %v1198_v42  ;;  %v1069_v63 = vpop.f32.mrf.mxu3  ;;  %v1183_v0 = vadd.f32 1.0, %v1764_v60  ;;  %v1766_v4 = vpop.eup %1765 }
 0x2a3   : > { %1771 = vpow2.f32 %v1134_v56  ;;  %v1070_v1 = vadd.f32 %v2107_v37, %v1069_v63  ;;  %1646 = vxpose.xlu0.b32.cont [12/16] (narrow) %v1645_v62, 8 }
 0x2a4   : > { %1773 = vrcp.f32 %v1183_v0 }
 0x2a5   : > { %v1104_v2 = vsub.f32 0.0, %v1070_v1 }
 0x2a7   : > { %v1768_v47 = vpop.eup %1767  ;;  %v1166_v5 = vmul.f32 1.442695, %v1104_v2 }
 0x2a8   : > { %v1770_v6 = vpop.eup %1769  ;;  %v1199_v41 = vadd.f32 1.0, %v1768_v47 }
 0x2a9   : > { %v1772_v8 = vpop.eup %1771  ;;  %1775 = vpow2.f32 %v1166_v5  ;;  %v1647_v10 = vpack.i.bf16 %v1770_v6, %v1766_v4 }
 0x2aa   : > { %1777 = vrcp.f32 %v1199_v41  ;;  %v1071_v11 = vpop.f32.mrf.mxu3  ;;  %v1184_v14 = vadd.f32 1.0, %v1772_v8  ;;  %v1774_v52 = vpop.eup %1773 }
 0x2ab   : > { %v1072_v13 = vadd.f32 %v2107_v37, %v1071_v11  ;;  %1648 = vxpose.xlu0.b32.cont [13/16] (narrow) %v1647_v10, 8  ;;  %1779 = vpow2.f32 %v1136_v7 }
 0x2ac   : > { %1781 = vrcp.f32 %v1184_v14 }
 0x2ad   : > { %v1105_v21 = vsub.f32 0.0, %v1072_v13 }
 0x2af   : > { %v1776_v15 = vpop.eup %1775  ;;  %v1168_v16 = vmul.f32 1.442695, %v1105_v21 }
 0x2b0   : > { %v1778_v3 = vpop.eup %1777  ;;  %v1200_v17 = vadd.f32 1.0, %v1776_v15 }
 0x2b1   : > { %1783 = vpow2.f32 %v1168_v16  ;;  %v1649_v19 = vpack.i.bf16 %v1778_v3, %v1774_v52  ;;  %v1780_v20 = vpop.eup %1779 }
 0x2b2   : > { %1785 = vrcp.f32 %v1200_v17  ;;  %v1185_v22 = vadd.f32 1.0, %v1780_v20  ;;  %v1782_v23 = vpop.eup %1781 }
 0x2b3   : > { %1650 = vxpose.xlu0.b32.cont [14/16] (narrow) %v1649_v19, 8 }
 0x2b4   : > { %1787 = vrcp.f32 %v1185_v22 }
 0x2b7   : > { %v1784_v24 = vpop.eup %1783 }
 0x2b8   : > { %v1786_v37 = vpop.eup %1785  ;;  %v1201_v25 = vadd.f32 1.0, %v1784_v24 }
 0x2b9   : > { %v1651_v26 = vpack.i.bf16 %v1786_v37, %v1782_v23 }
 0x2ba   : > { %1789 = vrcp.f32 %v1201_v25  ;;  %v1788_v28 = vpop.eup %1787 }
 0x2bb   : > { %1652 = vxpose.xlu0.b32.cont [15/16] (narrow) %v1651_v26, 8 }
 0x2c0   : > { %v1790_v29 = vpop.eup %1789 }
 0x2c1   : > { %v1653_v30 = vpack.i.bf16 %v1790_v29, %v1788_v28 }
 0x2c3   : > { %1654 = vxpose.xlu0.b32.end [16/16] (narrow) %v1653_v30, 8 }
 0x2ef   : > { %v1655_v57 = vpop.trf.xlu0 }
 0x2f0   : > { %v1659_v31 = vunpack.i.h.bf16 %v1655_v57  ;;  %v1656_v32 = vunpack.i.l.bf16 %v1655_v57 }
 0x2f2   : > { %v1298_v33 = vpack.c.bf16 %v1659_v31, %v1656_v32 }
 0x2f4   : > { %1299 = vst [vmem:[%s415_s19] sm:$0xff] %v1298_v33 }
 0x2f5 PF: > { %s17_s26 = sadd.s32 1, %s1813_s26   ;;  %s2181_s24 = smov %s1809_s25 }
 0x2f6   : > { %p14_p5 = scmp.ge.s32.totalorder %s17_s26, 4   ;;  %s2182_s25 = smov %s2184_s27 }
 0x2f8   :  { %16 = sbr.rel (!%p14_p5) target bundleno = 2 (0x2), region = 96 }

</bundles_post_ra>
